<compile_context>
chip_gen: v5e
topology: v5e:2x2
jax: 0.10.0
libtpu: 0.0.40
codegen_flags: <defaults>
</compile_context>

<pallas_src>
import jax
import jax.numpy as jnp
from jax.experimental import pallas as pl
from jax.experimental.pallas import tpu as pltpu  # noqa: F401  (TPU backend assumed)

HIDDEN = 30            # hidden_layer_size
SEQ = 30               # number of values in input_seq (the LSTM "batch" of 30)
FLAT = SEQ * HIDDEN    # 900


def _vmem_spec(shape):
    # No grid: whole array resident in VMEM as one block.
    return pl.BlockSpec(shape, lambda: (0,) * len(shape))


def fused_lstm_kernel(x_ref, gp_ref, w1_ref, head_ref, out_ref):
    """Fused LSTM cell (zero initial state) + Linear + softmax-gating + Linear + sigmoid.

    Layout: lane-flat index idx = t*30 + j (matches torch's lstm_out.view(1, -1)).
      x_ref    (1, 900)  : x[t] repeated 30 times
      gp_ref   (6, 900)  : rows [w_i, w_g, w_o, b_i, b_g, b_o] tiled across t
      w1_ref   (30, 900) : linear.weight, native layout (no transpose needed)
      head_ref (30, 3)   : columns [linear.bias, linear1.weight, linear1.bias (bcast)]
      out_ref  (1, 1)
    """
    x = x_ref[...]                               # (1, 900)
    gp = gp_ref[...]                             # (6, 900)
    wi, wg, wo = gp[0:1, :], gp[1:2, :], gp[2:3, :]
    bi, bg, bo = gp[3:4, :], gp[4:5, :], gp[5:6, :]

    gi = jax.nn.sigmoid(x * wi + bi)             # input gate      (1, 900)
    gg = jnp.tanh(x * wg + bg)                   # cell gate
    go = jax.nn.sigmoid(x * wo + bo)             # output gate
    # c0 == 0  =>  c = i*g (forget-gate path removed entirely)
    h = go * jnp.tanh(gi * gg)                   # == lstm_out.view(1, 900)

    head = head_ref[...]                         # (30, 3)
    b1 = head[:, 0:1]                            # (30, 1)
    w2 = head[:, 1:2]                            # (30, 1)
    b2 = head[0:1, 2:3]                          # (1, 1)

    # Linear(900 -> 30) on VPU + lane reduction (skip MXU: M=1, f32 operands).
    pred = jnp.sum(h * w1_ref[...], axis=1, keepdims=True) + b1     # (30, 1)

    # softmax over the 30 outputs (torch dim=1), numerically safe.
    m = jnp.max(pred, axis=0, keepdims=True)
    e = jnp.exp(pred - m)
    soft = e / jnp.sum(e, axis=0, keepdims=True)

    gated = pred * soft                                             # predictions * predictions1

    # Linear(30 -> 1) + sigmoid.
    out = jnp.sum(gated * w2, axis=0, keepdims=True) + b2           # (1, 1)
    out_ref[...] = jax.nn.sigmoid(out)


def prepare_params(w_ih, b_ih, b_hh, w1, b1, w2, b2):
    """One-time parameter preparation (hoisted out of the per-call forward).

    PyTorch gate order in weight_ih_l0 / biases is (i, f, g, o); the forget
    gate is dropped (dead because c0 == 0).  Gate weights/biases are tiled to
    the lane-flat (900,) layout so the kernel needs no relayouts.
    """
    wih = jnp.reshape(w_ih.astype(jnp.float32), (4 * HIDDEN,))      # (120,)
    bsum = (b_ih + b_hh).astype(jnp.float32)                        # (120,)

    def gate(vec, k):
        return vec[k * HIDDEN:(k + 1) * HIDDEN]

    rows = [jnp.tile(gate(wih, k), SEQ) for k in (0, 2, 3)]         # w_i, w_g, w_o
    rows += [jnp.tile(gate(bsum, k), SEQ) for k in (0, 2, 3)]       # b_i, b_g, b_o
    gparams = jnp.stack(rows, axis=0)                               # (6, 900)

    head = jnp.stack(
        [b1.astype(jnp.float32),
         jnp.reshape(w2.astype(jnp.float32), (HIDDEN,)),
         jnp.full((HIDDEN,), b2.astype(jnp.float32)[0])],
        axis=1)                                                     # (30, 3)

    return gparams, w1.astype(jnp.float32), head


_COST = pl.CostEstimate(
    flops=2 * FLAT * HIDDEN + 12 * FLAT,      # head matvec + gate elementwise
    transcendentals=5 * FLAT + HIDDEN + 1,    # 3 sigmoid + 2 tanh per elem, exp, sigmoid
    bytes_accessed=4 * (FLAT * (1 + 6 + HIDDEN) + 3 * HIDDEN + 1),
)


def lstm_forward(input_seq, prepped):
    gparams, w1, head = prepped
    # torch.reshape(input_seq, (30, 1)); expanded to lane-flat (1, 900) so the
    # kernel never has to do a sublane->lane relayout.  idx = t*30+j -> x[t].
    x_flat = jnp.repeat(
        jnp.reshape(input_seq, (SEQ,)).astype(jnp.float32), HIDDEN
    ).reshape(1, FLAT)

    out = pl.pallas_call(
        fused_lstm_kernel,
        out_shape=jax.ShapeDtypeStruct((1, 1), jnp.float32),
        in_specs=[_vmem_spec((1, FLAT)),
                  _vmem_spec((6, FLAT)),
                  _vmem_spec((HIDDEN, FLAT)),
                  _vmem_spec((HIDDEN, 3))],
        out_specs=_vmem_spec((1, 1)),
        cost_estimate=_COST,
    )(x_flat, gparams, w1, head)
    return out                                  # (1, 1), same as torch


def init_params(key):
    """Deterministic synthetic parameters with the shapes nn.LSTM / nn.Linear use."""
    ks = jax.random.split(key, 7)
    bl = 1.0 / jnp.sqrt(jnp.float32(HIDDEN))
    w_ih = jax.random.uniform(ks[0], (4 * HIDDEN, 1), jnp.float32, -bl, bl)      # lstm.weight_ih_l0
    b_ih = jax.random.uniform(ks[1], (4 * HIDDEN,), jnp.float32, -bl, bl)        # lstm.bias_ih_l0
    b_hh = jax.random.uniform(ks[2], (4 * HIDDEN,), jnp.float32, -bl, bl)        # lstm.bias_hh_l0
    b1l = 1.0 / jnp.sqrt(jnp.float32(FLAT))
    w1 = jax.random.uniform(ks[3], (HIDDEN, FLAT), jnp.float32, -b1l, b1l)       # linear (30, 900)
    b1 = jax.random.uniform(ks[4], (HIDDEN,), jnp.float32, -b1l, b1l)
    b2l = 1.0 / jnp.sqrt(jnp.float32(HIDDEN))
    w2 = jax.random.uniform(ks[5], (1, HIDDEN), jnp.float32, -b2l, b2l)          # linear1 (1, 30)
    b2 = jax.random.uniform(ks[6], (1,), jnp.float32, -b2l, b2l)
    return (w_ih, b_ih, b_hh, w1, b1, w2, b2)


def reference_forward(input_seq, params):
    """Pure-JAX replica of the PyTorch forward for a correctness check."""
    w_ih, b_ih, b_hh, w1, b1, w2, b2 = params
    x = jnp.reshape(input_seq, (SEQ, 1)).astype(jnp.float32)
    gates = x @ w_ih.T + (b_ih + b_hh)[None, :]                  # (30, 120)
    i = jax.nn.sigmoid(gates[:, 0 * HIDDEN:1 * HIDDEN])
    g = jnp.tanh(gates[:, 2 * HIDDEN:3 * HIDDEN])
    o = jax.nn.sigmoid(gates[:, 3 * HIDDEN:4 * HIDDEN])
    h = o * jnp.tanh(i * g)                                      # (30, 30), c0 == 0
    pred = h.reshape(1, FLAT) @ w1.T + b1[None, :]               # (1, 30)
    soft = jax.nn.softmax(pred, axis=1)
    pred = pred * soft
    return jax.nn.sigmoid(pred @ w2.T + b2[None, :])             # (1, 1)


if __name__ == "__main__":
    key = jax.random.PRNGKey(0)
    k_in, k_par = jax.random.split(key)
    # input_seq: any tensor with 30 elements (torch reshapes it to (30, 1)).
    input_seq = jax.random.normal(k_in, (SEQ,), jnp.float32)
    raw_params = init_params(k_par)
    prepped = prepare_params(*raw_params)        # one-time prep (outside jit)

    fwd = jax.jit(lstm_forward)
    out = fwd(input_seq, prepped)
    jax.block_until_ready(out)

    ref = reference_forward(input_seq, raw_params)
    assert out.shape == (1, 1) and out.dtype == jnp.float32
    assert jnp.allclose(out, ref, atol=2e-3, rtol=2e-3), (out, ref)
    print("KERNEL_OK")
</pallas_src>

<mosaic_0001>
module attributes {stable_mosaic.version = 11 : i64} {
  func.func @fused_lstm_kernel(%arg0: memref<1x900xf32, #tpu.memory_space<vmem>>, %arg1: memref<6x900xf32, #tpu.memory_space<vmem>>, %arg2: memref<30x900xf32, #tpu.memory_space<vmem>>, %arg3: memref<30x3xf32, #tpu.memory_space<vmem>>, %arg4: memref<1x1xf32, #tpu.memory_space<vmem>>) attributes {dimension_semantics = [], scalar_prefetch = 0 : i64, scratch_operands = 0 : i64, tpu.core_type = #tpu.core_type<tc>} {
    %c0 = arith.constant 0 : index
    %c0_0 = arith.constant 0 : index
    %0 = vector.load %arg0[%c0, %c0_0] : memref<1x900xf32, #tpu.memory_space<vmem>>, vector<1x900xf32>
    %c0_1 = arith.constant 0 : index
    %c0_2 = arith.constant 0 : index
    %1 = vector.load %arg1[%c0_1, %c0_2] : memref<6x900xf32, #tpu.memory_space<vmem>>, vector<6x900xf32>
    %2 = vector.extract_strided_slice %1 {offsets = [0, 0], sizes = [1, 900], strides = [1, 1]} : vector<6x900xf32> to vector<1x900xf32>
    %3 = vector.extract_strided_slice %1 {offsets = [1, 0], sizes = [1, 900], strides = [1, 1]} : vector<6x900xf32> to vector<1x900xf32>
    %4 = vector.extract_strided_slice %1 {offsets = [2, 0], sizes = [1, 900], strides = [1, 1]} : vector<6x900xf32> to vector<1x900xf32>
    %5 = vector.extract_strided_slice %1 {offsets = [3, 0], sizes = [1, 900], strides = [1, 1]} : vector<6x900xf32> to vector<1x900xf32>
    %6 = vector.extract_strided_slice %1 {offsets = [4, 0], sizes = [1, 900], strides = [1, 1]} : vector<6x900xf32> to vector<1x900xf32>
    %7 = vector.extract_strided_slice %1 {offsets = [5, 0], sizes = [1, 900], strides = [1, 1]} : vector<6x900xf32> to vector<1x900xf32>
    %8 = arith.mulf %0, %2 : vector<1x900xf32>
    %9 = arith.addf %8, %5 : vector<1x900xf32>
    %10 = arith.negf %9 : vector<1x900xf32>
    %11 = math.exp %10 : vector<1x900xf32>
    %cst = arith.constant 1.000000e+00 : f32
    %12 = vector.broadcast %cst : f32 to vector<1x900xf32>
    %13 = arith.addf %12, %11 : vector<1x900xf32>
    %14 = arith.divf %12, %13 : vector<1x900xf32>
    %15 = arith.mulf %0, %3 : vector<1x900xf32>
    %16 = arith.addf %15, %6 : vector<1x900xf32>
    %17 = math.tanh %16 : vector<1x900xf32>
    %18 = arith.mulf %0, %4 : vector<1x900xf32>
    %19 = arith.addf %18, %7 : vector<1x900xf32>
    %20 = arith.negf %19 : vector<1x900xf32>
    %21 = math.exp %20 : vector<1x900xf32>
    %cst_3 = arith.constant 1.000000e+00 : f32
    %22 = vector.broadcast %cst_3 : f32 to vector<1x900xf32>
    %23 = arith.addf %22, %21 : vector<1x900xf32>
    %24 = arith.divf %22, %23 : vector<1x900xf32>
    %25 = arith.mulf %14, %17 : vector<1x900xf32>
    %26 = math.tanh %25 : vector<1x900xf32>
    %27 = arith.mulf %24, %26 : vector<1x900xf32>
    %c0_4 = arith.constant 0 : index
    %c0_5 = arith.constant 0 : index
    %28 = vector.load %arg3[%c0_4, %c0_5] : memref<30x3xf32, #tpu.memory_space<vmem>>, vector<30x3xf32>
    %29 = vector.extract_strided_slice %28 {offsets = [0, 0], sizes = [30, 1], strides = [1, 1]} : vector<30x3xf32> to vector<30x1xf32>
    %30 = vector.extract_strided_slice %28 {offsets = [0, 1], sizes = [30, 1], strides = [1, 1]} : vector<30x3xf32> to vector<30x1xf32>
    %31 = vector.extract_strided_slice %28 {offsets = [0, 2], sizes = [1, 1], strides = [1, 1]} : vector<30x3xf32> to vector<1x1xf32>
    %c0_6 = arith.constant 0 : index
    %c0_7 = arith.constant 0 : index
    %32 = vector.load %arg2[%c0_6, %c0_7] : memref<30x900xf32, #tpu.memory_space<vmem>>, vector<30x900xf32>
    %33 = vector.broadcast %27 : vector<1x900xf32> to vector<30x900xf32>
    %34 = arith.mulf %33, %32 : vector<30x900xf32>
    %cst_8 = arith.constant dense<0.000000e+00> : vector<30xf32>
    %35 = vector.multi_reduction <add>, %34, %cst_8 [1] : vector<30x900xf32> to vector<30xf32>
    %36 = vector.shape_cast %35 : vector<30xf32> to vector<30x1xf32>
    %37 = arith.addf %36, %29 : vector<30x1xf32>
    %cst_9 = arith.constant dense<0xFF800000> : vector<1xf32>
    %38 = vector.multi_reduction <maximumf>, %37, %cst_9 [0] : vector<30x1xf32> to vector<1xf32>
    %39 = vector.shape_cast %38 : vector<1xf32> to vector<1x1xf32>
    %40 = vector.broadcast %39 : vector<1x1xf32> to vector<30x1xf32>
    %41 = arith.subf %37, %40 : vector<30x1xf32>
    %42 = math.exp %41 : vector<30x1xf32>
    %cst_10 = arith.constant dense<0.000000e+00> : vector<1xf32>
    %43 = vector.multi_reduction <add>, %42, %cst_10 [0] : vector<30x1xf32> to vector<1xf32>
    %44 = vector.shape_cast %43 : vector<1xf32> to vector<1x1xf32>
    %45 = vector.broadcast %44 : vector<1x1xf32> to vector<30x1xf32>
    %46 = arith.divf %42, %45 : vector<30x1xf32>
    %47 = arith.mulf %37, %46 : vector<30x1xf32>
    %48 = arith.mulf %47, %30 : vector<30x1xf32>
    %cst_11 = arith.constant dense<0.000000e+00> : vector<1xf32>
    %49 = vector.multi_reduction <add>, %48, %cst_11 [0] : vector<30x1xf32> to vector<1xf32>
    %50 = vector.shape_cast %49 : vector<1xf32> to vector<1x1xf32>
    %51 = arith.addf %50, %31 : vector<1x1xf32>
    %52 = arith.negf %51 : vector<1x1xf32>
    %53 = math.exp %52 : vector<1x1xf32>
    %cst_12 = arith.constant 1.000000e+00 : f32
    %54 = vector.broadcast %cst_12 : f32 to vector<1x1xf32>
    %55 = arith.addf %54, %53 : vector<1x1xf32>
    %56 = arith.divf %54, %55 : vector<1x1xf32>
    %c0_13 = arith.constant 0 : index
    %c0_14 = arith.constant 0 : index
    %57 = vector.load %arg4[%c0_13, %c0_14] : memref<1x1xf32, #tpu.memory_space<vmem>>, vector<1x1xf32>
    tpu.vector_store %arg4[%c0_13, %c0_14], %56 {strides = array<i32>} : memref<1x1xf32, #tpu.memory_space<vmem>>, vector<1x1xf32>,
    return
  }
}

</mosaic_0001>

<bundles_post_ra>
// kernel: lstm_forward.1
= control target key start
LH: loop header
LB: loop body
LE: loop exit
PB: predicated region body
PF: predicated region fallthrough
CT: control target
= control target key end

     0   :  { %9 = vsyncpa [#allocation3], 0  ;;  %s769_s0 = inlined_call_operand.vmem [shape: f32[1,900], index: 0, kind: input, shape index: {}]   ;;  %s770_s1 = inlined_call_operand.vmem [shape: f32[6,900], index: 1, kind: input, shape index: {}]   ;;  %s771_s2 = inlined_call_operand.hbm [shape: f32[30,900], index: 2, kind: input, shape index: {}]   ;;  %s772_s3 = inlined_call_operand.vmem [shape: f32[30,3], index: 3, kind: input, shape index: {}]   ;;  %s773_s4 = inlined_call_operand.hbm [shape: f32[1,1], index: 4, kind: output, shape index: {}]  }
   0x1   :  { %10 = vsyncpa [#allocation4], 0  ;;  %s19_s17 = sshll.u32 %s771_s2, 4  ;;  %s539_s18 = smov [#allocation2]   ;;  %s20_s17 = int_to_ptr.hbm [resolvable:$true] %s19_s17 }
   0x2   :  { %s21_s19 = sshll.u32 %s539_s18, 4  ;;  %s540_s20 = smov 1024   ;;  %s22_s19 = int_to_ptr.vmem [resolvable:$true] %s21_s19 }
   0x3   :  { %s541_s21 = smov 64  }
   0x4   :  { %27 = dma.hbm_to_vmem [thread:$0]  %s20_s17, 4096, %s22_s19, [#allocation3], %s540_s20, %s540_s20, %s541_s21  }
   0x5   :  { %535 = dma.done.wait [#allocation3], 4096  }
   0x6   :  { %536 = vsyncadd [#allocation3], 4294963200  ;;  %v576_v0 = vld [vmem:[%s770_s1] sm:$0x3f]  ;;  %v581_v1 = vld [vmem:[%s770_s1 + $0x8] sm:$0x3f] }
   0x7   :  { %v586_v2 = vld [vmem:[%s770_s1 + $0x10] sm:$0x3f]  ;;  %v591_v3 = vld [vmem:[%s770_s1 + $0x18] sm:$0x3f]  ;;  %74 = vst [vmem:[#allocation1] sm:$0xff] %v576_v0  ;;  %v51_v9 = vrot.slane %v581_v1, 7 }
   0x8   :  { %v597_v4 = vld [vmem:[%s770_s1 + $0x20] sm:$0x3f]  ;;  %75 = vst [vmem:[#allocation1 + $0x9] sm:$0xff] %v581_v1  ;;  %v603_v5 = vld [vmem:[%s770_s1 + $0x28] sm:$0x3f]  ;;  %v52_v10 = vrot.slane %v586_v2, 6 }
   0x9   :  { %76 = vst [vmem:[#allocation1 + $0x12] sm:$0xff] %v586_v2  ;;  %v609_v6 = vld [vmem:[%s770_s1 + $0x30] sm:$0x3f]  ;;  %v615_v7 = vld [vmem:[%s770_s1 + $0x38] sm:$0x3f]  ;;  %v53_v11 = vrot.slane %v591_v3, 5 }
   0xa   :  { %77 = vst [vmem:[#allocation1 + $0x1b] sm:$0xff] %v591_v3  ;;  %v54_v12 = vrot.slane %v597_v4, 4  ;;  %v55_v13 = vrot.slane %v603_v5, 3  ;;  %v56_v14 = vrot.slane %v609_v6, 2  ;;  %v57_v15 = vrot.slane %v615_v7, 1  ;;  %v34_v23 = vld [vmem:[%s769_s0] sm:$0xff] }
   0xb   :  { %78 = vst [vmem:[#allocation1 + $0x24] sm:$0xff] %v597_v4  ;;  %vm58_vm0 = vcmask 1040384   ;;  %vm60_vm1 = vcmask 1042434   ;;  %vm64_vm2 = vcmask 1044484   ;;  %vm66_vm3 = vcmask 1046534   ;;  %s542_s13 = smov 127  }
   0xc   :  { %79 = vst [vmem:[#allocation1 + $0x2d] sm:$0xff] %v603_v5  ;;  %vm62_vm4 = vcmask 1041408   ;;  %vm68_vm5 = vcmask 1045508   ;;  %v59_v16 = vsel %vm58_vm0, %v576_v0, %v51_v9  ;;  %v61_v17 = vsel %vm60_vm1, %v52_v10, %v53_v11  ;;  %v180_v9 = vld [vmem:[#allocation2] sm:$0xff]  ;;  %v181_v10 = vld [vmem:[#allocation2 + $0x8] sm:$0xff]  ;;  %v182_v11 = vld [vmem:[#allocation2 + $0x10] sm:$0xff] }
   0xd   :  { %80 = vst [vmem:[#allocation1 + $0x36] sm:$0xff] %v609_v6  ;;  %v65_v18 = vsel %vm64_vm2, %v54_v12, %v55_v13  ;;  %v67_v19 = vsel %vm66_vm3, %v56_v14, %v57_v15  ;;  %v63_v21 = vsel %vm62_vm4, %v59_v16, %v61_v17  ;;  %vm70_vm6 = vcmask 1043456   ;;  %v200_v12 = vld [vmem:[#allocation2 + $0xa0] sm:$0xff]  ;;  %v201_v17 = vld [vmem:[#allocation2 + $0xa8] sm:$0xff]  ;;  %s543_s16 = smov 126   ;;  %s442_s24 = sshll.u32 %s773_s4, 4  ;;  %s443_s24 = int_to_ptr.hbm [resolvable:$true] %s442_s24 }
   0xe   :  { %81 = vst [vmem:[#allocation1 + $0x3f] sm:$0xff] %v615_v7  ;;  %v69_v22 = vsel %vm68_vm5, %v65_v18, %v67_v19  ;;  %v203_v18 = vld [vmem:[#allocation2 + $0xb8] sm:$0xff]  ;;  %vm267_vm15 = vcmask 31744   ;;  %vm292_vm0 = vcmask 1045504   ;;  %vm306_vm1 = vcmask 29696  }
   0xf   :  { %v71_v24 = vsel %vm70_vm6, %v63_v21, %v69_v22  ;;  %v183_v21 = vld [vmem:[#allocation2 + $0x18] sm:$0xff]  ;;  %vm319_vm2 = vcmask 5120   ;;  %vm315_vm3 = vcmask 7168  }
  0x10   :  { %v73_v25 = vmul.f32 %v71_v24, %v34_v23 }
  0x15   :  { %v83_v8 = vld [vmem:[#allocation1 + $0x3] ss:$9 sm:$0xff] }
  0x16   :  { %105 = vst [vmem:[#allocation1] sm:$0xff] %v576_v0  ;;  %v85_v26 = vadd.f32 %v83_v8, %v73_v25 }
  0x17   :  { %106 = vst [vmem:[#allocation1 + $0x9] sm:$0xff] %v581_v1 }
  0x18   :  { %107 = vst [vmem:[#allocation1 + $0x12] sm:$0xff] %v586_v2  ;;  %v452_v27 = vmul.f32 -1.442695, %v85_v26  ;;  %v204_v26 = vld [vmem:[#allocation2 + $0xc0] sm:$0x3f] }
  0x19   :  { %108 = vst [vmem:[#allocation1 + $0x1b] sm:$0xff] %v591_v3 }
  0x1a   :  { %109 = vst [vmem:[#allocation1 + $0x24] sm:$0xff] %v597_v4  ;;  %461 = vpow2.f32 %v452_v27  ;;  %v205_v27 = vld [vmem:[#allocation2 + $0xc8] sm:$0x3f] }
  0x1b   :  { %110 = vst [vmem:[#allocation1 + $0x2d] sm:$0xff] %v603_v5 }
  0x1c   :  { %111 = vst [vmem:[#allocation1 + $0x36] sm:$0xff] %v609_v6 }
  0x1d   :  { %112 = vst [vmem:[#allocation1 + $0x3f] sm:$0xff] %v615_v7 }
  0x20   :  { %v462_v29 = vpop.eup %461 }
  0x21   :  { %v89_v30 = vadd.f32 1.0, %v462_v29 }
  0x23   :  { %463 = vrcp.f32 %v89_v30  ;;  %vm95_vm7 = vweird.f32 %v89_v30  ;;  %v101_v42 = vand.u32 2147483648, %v89_v30  ;;  %v99_v44 = vand.u32 2147483647, %v89_v30 }
  0x24   :  { %v114_v20 = vld [vmem:[#allocation1 + $0x1] ss:$9 sm:$0xff] }
  0x25   :  { %117 = vst [vmem:[#allocation1] sm:$0xff] %v576_v0  ;;  %v116_v37 = vmul.f32 %v114_v20, %v34_v23  ;;  %v102_v46 = vor.u32 1.1754944e-38, %v101_v42  ;;  %vm100_vm10 = vcmp.eq.f32.partialorder %v99_v44, 8.507059e+37 }
  0x26   :  { %118 = vst [vmem:[#allocation1 + $0x9] sm:$0xff] %v581_v1 }
  0x27   :  { %119 = vst [vmem:[#allocation1 + $0x12] sm:$0xff] %v586_v2 }
  0x28   :  { %120 = vst [vmem:[#allocation1 + $0x1b] sm:$0xff] %v591_v3 }
  0x29   :  { %121 = vst [vmem:[#allocation1 + $0x24] sm:$0xff] %v597_v4  ;;  %v464_v32 = vpop.eup %463 }
  0x2a   :  { %122 = vst [vmem:[#allocation1 + $0x2d] sm:$0xff] %v603_v5  ;;  %v91_v33 = vmul.f32 %v464_v32, %v89_v30  ;;  %vm96_vm8 = vweird.f32 %v464_v32 }
  0x2b   :  { %123 = vst [vmem:[#allocation1 + $0x36] sm:$0xff] %v609_v6  ;;  %vm97_vm9 = vmor %vm95_vm7, %vm96_vm8 }
  0x2c   :  { %124 = vst [vmem:[#allocation1 + $0x3f] sm:$0xff] %v615_v7  ;;  %v92_v35 = vsub.f32 1.0, %v91_v33  ;;  %v202_v33 = vld [vmem:[#allocation2 + $0xb0] sm:$0xff] }
  0x2e   :  { %v93_v40 = vmul.f32 %v464_v32, %v92_v35 }
  0x30   :  { %v94_v43 = vadd.f32 %v464_v32, %v93_v40 }
  0x32   :  { %v98_v47 = vsel %vm97_vm9, %v464_v32, %v94_v43  ;;  %v207_v32 = vld [vmem:[#allocation2 + $0xd8] sm:$0x3f] }
  0x33   :  { %v126_v28 = vld [vmem:[#allocation1 + $0x4] ss:$9 sm:$0xff]  ;;  %v103_v50 = vsel %vm100_vm10, %v102_v46, %v98_v47 }
  0x34   :  { %130 = vst [vmem:[#allocation1] sm:$0xff] %v576_v0  ;;  %v128_v41 = vadd.f32 %v126_v28, %v116_v37  ;;  %v206_v28 = vld [vmem:[#allocation2 + $0xd0] sm:$0x3f] }
  0x35   :  { %131 = vst [vmem:[#allocation1 + $0x9] sm:$0xff] %v581_v1 }
  0x36   :  { %132 = vst [vmem:[#allocation1 + $0x12] sm:$0xff] %v586_v2 }
  0x37   :  { %133 = vst [vmem:[#allocation1 + $0x1b] sm:$0xff] %v591_v3 }
  0x38   :  { %134 = vst [vmem:[#allocation1 + $0x24] sm:$0xff] %v597_v4 }
  0x39   :  { %135 = vst [vmem:[#allocation1 + $0x2d] sm:$0xff] %v603_v5 }
  0x3a   :  { %136 = vst [vmem:[#allocation1 + $0x36] sm:$0xff] %v609_v6 }
  0x3b   :  { %137 = vst [vmem:[#allocation1 + $0x3f] sm:$0xff] %v615_v7 }
  0x42   :  { %v139_v31 = vld [vmem:[#allocation1 + $0x2] ss:$9 sm:$0xff] }
  0x43   :  { %142 = vst [vmem:[#allocation1] sm:$0xff] %v576_v0  ;;  %v141_v34 = vmul.f32 %v139_v31, %v34_v23  ;;  %v196_v0 = vld [vmem:[#allocation2 + $0x80] sm:$0xff] }
  0x44   :  { %143 = vst [vmem:[#allocation1 + $0x9] sm:$0xff] %v581_v1  ;;  %v197_v1 = vld [vmem:[#allocation2 + $0x88] sm:$0xff]  ;;  %v184_v31 = vld [vmem:[#allocation2 + $0x20] sm:$0xff] }
  0x45   :  { %144 = vst [vmem:[#allocation1 + $0x12] sm:$0xff] %v586_v2  ;;  %v198_v2 = vld [vmem:[#allocation2 + $0x90] sm:$0xff] }
  0x46   :  { %145 = vst [vmem:[#allocation1 + $0x1b] sm:$0xff] %v591_v3  ;;  %v199_v3 = vld [vmem:[#allocation2 + $0x98] sm:$0xff] }
  0x47   :  { %146 = vst [vmem:[#allocation1 + $0x24] sm:$0xff] %v597_v4 }
  0x48   :  { %147 = vst [vmem:[#allocation1 + $0x2d] sm:$0xff] %v603_v5 }
  0x49   :  { %148 = vst [vmem:[#allocation1 + $0x36] sm:$0xff] %v609_v6 }
  0x4a   :  { %149 = vst [vmem:[#allocation1 + $0x3f] sm:$0xff] %v615_v7 }
  0x51   :  { %v151_v36 = vld [vmem:[#allocation1 + $0x5] ss:$9 sm:$0xff] }
  0x52   :  { %v153_v38 = vadd.f32 %v151_v36, %v141_v34  ;;  %v185_v36 = vld [vmem:[#allocation2 + $0x28] sm:$0xff] }
  0x54   :  { %v453_v39 = vmul.f32 -1.442695, %v153_v38 }
  0x56   :  { %465 = vpow2.f32 %v453_v39  ;;  %v208_v39 = vld [vmem:[#allocation2 + $0xe0] sm:$0x3f] }
  0x57   :  { %467 = vtanh.f32 %v128_v41 }
  0x5c   :  { %v466_v45 = vpop.eup %465 }
  0x5d   :  { %v157_v48 = vadd.f32 1.0, %v466_v45  ;;  %v468_v49 = vpop.eup %467  ;;  %v187_v45 = vld [vmem:[#allocation2 + $0x38] sm:$0xff] }
  0x5e   :  { %v173_v51 = vmul.f32 %v468_v49, %v103_v50 }
  0x5f   :  { %469 = vrcp.f32 %v157_v48  ;;  %v169_v54 = vand.u32 2147483648, %v157_v48  ;;  %vm163_vm11 = vweird.f32 %v157_v48  ;;  %v167_v56 = vand.u32 2147483647, %v157_v48 }
  0x60   :  { %471 = vtanh.f32 %v173_v51  ;;  %v186_v51 = vld [vmem:[#allocation2 + $0x30] sm:$0xff] }
  0x61   :  { %v170_v58 = vor.u32 1.1754944e-38, %v169_v54  ;;  %vm168_vm14 = vcmp.eq.f32.partialorder %v167_v56, 8.507059e+37 }
  0x65   :  { %v470_v52 = vpop.eup %469 }
  0x66   :  { %v159_v53 = vmul.f32 %v470_v52, %v157_v48  ;;  %vm164_vm12 = vweird.f32 %v470_v52  ;;  %v472_v60 = vpop.eup %471  ;;  %v209_v48 = vld [vmem:[#allocation2 + $0xe8] sm:$0x3f] }
  0x67   :  { %vm165_vm13 = vmor %vm163_vm11, %vm164_vm12  ;;  %vm433_vm11 = vcmask 0  }
  0x68   :  { %v160_v55 = vsub.f32 1.0, %v159_v53 }
  0x6a   :  { %v161_v57 = vmul.f32 %v470_v52, %v160_v55 }
  0x6c   :  { %v162_v59 = vadd.f32 %v470_v52, %v161_v57  ;;  %v210_v57 = vld [vmem:[#allocation2 + $0xf0] sm:$0x3f] }
  0x6e   :  { %v166_v61 = vsel %vm165_vm13, %v470_v52, %v162_v59 }
  0x6f   :  { %v171_v62 = vsel %vm168_vm14, %v170_v58, %v166_v61  ;;  %v189_v61 = vld [vmem:[#allocation2 + $0x48] sm:$0xff] }
  0x70   :  { %v175_v63 = vmul.f32 %v472_v60, %v171_v62  ;;  %v188_v60 = vld [vmem:[#allocation2 + $0x40] sm:$0xff] }
  0x72   :  { %v664_v4 = vperm.slane %v175_v63, 0  ;;  %v666_v5 = vperm.slane %v175_v63, 1  ;;  %v668_v6 = vperm.slane %v175_v63, 2  ;;  %v670_v7 = vperm.slane %v175_v63, 3 }
  0x73   :  { %v672_v8 = vperm.slane %v175_v63, 4  ;;  %v674_v13 = vperm.slane %v175_v63, 5  ;;  %v679_v19 = vperm.slane %v175_v63, 7  ;;  %v685_v29 = vperm.slane %v175_v63, 6 }
  0x74   :  { %v245_v14 = vmul.f32 %v664_v4, %v196_v0  ;;  %v246_v15 = vmul.f32 %v666_v5, %v197_v1  ;;  %v247_v16 = vmul.f32 %v668_v6, %v198_v2  ;;  %v248_v20 = vmul.f32 %v670_v7, %v199_v3  ;;  %v190_v2 = vld [vmem:[#allocation2 + $0x50] sm:$0xff] }
  0x75   :  { %v229_v23 = vmul.f32 %v664_v4, %v180_v9  ;;  %v230_v24 = vmul.f32 %v666_v5, %v181_v10  ;;  %v231_v25 = vmul.f32 %v668_v6, %v182_v11  ;;  %v249_v30 = vmul.f32 %v672_v8, %v200_v12  ;;  %v211_v11 = vld [vmem:[#allocation2 + $0xf8] sm:$0x3f] }
  0x76   :  { %v282_v22 = vadd.f32 %v246_v15, %v245_v14  ;;  %v250_v34 = vmul.f32 %v674_v13, %v201_v17  ;;  %v232_v37 = vmul.f32 %v670_v7, %v183_v21  ;;  %v252_v40 = vmul.f32 %v679_v19, %v203_v18 }
  0x77   :  { %v261_v38 = vadd.f32 %v230_v24, %v229_v23  ;;  %v253_v41 = vmul.f32 %v664_v4, %v204_v26  ;;  %v254_v42 = vmul.f32 %v666_v5, %v205_v27  ;;  %v255_v43 = vmul.f32 %v668_v6, %v206_v28  ;;  %v192_v28 = vld [vmem:[#allocation2 + $0x60] sm:$0xff] }
  0x78   :  { %v283_v35 = vadd.f32 %v282_v22, %v247_v16  ;;  %v233_v46 = vmul.f32 %v672_v8, %v184_v31  ;;  %v256_v49 = vmul.f32 %v670_v7, %v207_v32  ;;  %v251_v50 = vmul.f32 %v685_v29, %v202_v33  ;;  %v191_v16 = vld [vmem:[#allocation2 + $0x58] sm:$0xff]  ;;  %v193_v33 = vld [vmem:[#allocation2 + $0x68] sm:$0xff] }
  0x79   :  { %v262_v47 = vadd.f32 %v261_v38, %v231_v25  ;;  %v234_v52 = vmul.f32 %v674_v13, %v185_v36  ;;  %v257_v53 = vmul.f32 %v672_v8, %v208_v39  ;;  %v293_v54 = vsel %vm292_vm0, %v253_v41, 0.0  ;;  %v194_v39 = vld [vmem:[#allocation2 + $0x70] sm:$0xff] }
  0x7a   :  { %v284_v44 = vadd.f32 %v283_v35, %v248_v20  ;;  %v294_v58 = vsel %vm292_vm0, %v254_v42, 0.0  ;;  %v296_v59 = vsel %vm292_vm0, %v255_v43, 0.0  ;;  %v288_v62 = vsel %vm267_vm15, %v252_v40, 0.0  ;;  %v195_v35 = vld [vmem:[#allocation2 + $0x78] sm:$0xff] }
  0x7b   :  { %v263_v56 = vadd.f32 %v262_v47, %v232_v37  ;;  %v236_v63 = vmul.f32 %v679_v19, %v187_v45  ;;  %v258_v0 = vmul.f32 %v674_v13, %v209_v48  ;;  %v295_v1 = vadd.f32 %v294_v58, %v293_v54  ;;  %v176_v40 = vld [vmem:[%s772_s3] sm:$0xff] }
  0x7c   :  { %v285_v55 = vadd.f32 %v284_v44, %v249_v30  ;;  %v235_v9 = vmul.f32 %v685_v29, %v186_v51  ;;  %v298_v12 = vsel %vm292_vm0, %v256_v49, 0.0  ;;  %v259_v14 = vmul.f32 %v685_v29, %v210_v57  ;;  %381 = vrot.lane.b32.xlu2 %v176_v40, %s542_s13  ;;  %v177_v49 = vld [vmem:[%s772_s3 + $0x8] sm:$0xff] }
  0x7d   :  { %v264_v10 = vadd.f32 %v263_v56, %v233_v46  ;;  %v297_v15 = vadd.f32 %v296_v59, %v295_v1  ;;  %v237_v17 = vmul.f32 %v664_v4, %v188_v60  ;;  %v238_v18 = vmul.f32 %v666_v5, %v189_v61 }
  0x7e   :  { %v286_v3 = vadd.f32 %v285_v55, %v250_v34  ;;  %v300_v22 = vsel %vm292_vm0, %v257_v53, 0.0  ;;  %v239_v23 = vmul.f32 %v668_v6, %v190_v2  ;;  %v268_v24 = vsel %vm267_vm15, %v236_v63, 0.0 }
  0x7f   :  { %v265_v21 = vadd.f32 %v264_v10, %v234_v52  ;;  %v260_v25 = vmul.f32 %v679_v19, %v211_v11  ;;  %v299_v26 = vadd.f32 %v298_v12, %v297_v15  ;;  %v302_v27 = vsel %vm292_vm0, %v258_v0, 0.0 }
  0x80   :  { %v287_v20 = vadd.f32 %v286_v3, %v251_v50  ;;  %v240_v4 = vmul.f32 %v670_v7, %v191_v16  ;;  %v272_v32 = vadd.f32 %v238_v18, %v237_v17  ;;  %v304_v6 = vsel %vm292_vm0, %v259_v14, 0.0 }
  0x81   :  { %v266_v31 = vadd.f32 %v265_v21, %v235_v9  ;;  %v301_v5 = vadd.f32 %v300_v22, %v299_v26  ;;  %v241_v36 = vmul.f32 %v672_v8, %v192_v28  ;;  %v307_v7 = vsel %vm306_vm1, %v260_v25, 0.0 }
  0x82   :  { %v289_v30 = vadd.f32 %v288_v62, %v287_v20  ;;  %v273_v37 = vadd.f32 %v272_v32, %v239_v23  ;;  %v242_v41 = vmul.f32 %v674_v13, %v193_v33  ;;  %v244_v44 = vmul.f32 %v679_v19, %v195_v35  ;;  %v178_v19 = vld [vmem:[%s772_s3 + $0x10] sm:$0xff] }
  0x83   :  { %v269_v34 = vadd.f32 %v268_v24, %v266_v31  ;;  %v303_v38 = vadd.f32 %v302_v27, %v301_v5  ;;  %v243_v45 = vmul.f32 %v685_v29, %v194_v39  ;;  %v179_v29 = vld [vmem:[%s772_s3 + $0x18] sm:$0x3f]  ;;  %s544_s3 = smov [#allocation5]  }
  0x84   :  { %290 = vadd.xlane.f32.xlu1 %v289_v30  ;;  %v274_v42 = vadd.f32 %v273_v37, %v240_v4  ;;  %v278_v48 = vsel %vm267_vm15, %v244_v44, 0.0  ;;  %383 = vrot.lane.b32.xlu2 %v177_v49, %s542_s13  ;;  %s440_s21 = sshll.u32 %s544_s3, 4  ;;  %s441_s21 = int_to_ptr.vmem [resolvable:$true] %s440_s21 }
  0x85   :  { %270 = vadd.xlane.f32.xlu0 %v269_v34  ;;  %v305_v43 = vadd.f32 %v304_v6, %v303_v38 }
  0x86   :  { %v275_v8 = vadd.f32 %v274_v42, %v241_v36 }
  0x87   :  { %v308_v46 = vadd.f32 %v307_v7, %v305_v43 }
  0x88   :  { %v276_v47 = vadd.f32 %v275_v8, %v242_v41 }
  0x8a   :  { %v277_v50 = vadd.f32 %v276_v47, %v243_v45 }
  0x8c   :  { %309 = vadd.xlane.f32.xlu1 %v308_v46  ;;  %v279_v13 = vadd.f32 %v278_v48, %v277_v50  ;;  %410 = vrot.lane.b32.xlu2 %v176_v40, %s543_s16 }
  0x8e   :  { %280 = vadd.xlane.f32.xlu0 %v279_v13 }
  0xa2   :  { %385 = vrot.lane.b32.xlu0 %v178_v19, %s542_s13 }
  0xa5   :  { %387 = vrot.lane.b32.xlu1 %v179_v29, %s542_s13 }
  0xf7   :  { %v291_v51 = vpop.xlane.xlu1 %290 }
  0xf8   :  { %v271_v52 = vpop.xlane.xlu0 %270  ;;  %v734_v54 = vadd.f32 %v291_v51, %v178_v19 }
  0xf9   :  { %v738_v56 = vadd.f32 %v271_v52, %v176_v40  ;;  %v382_v40 = vpop.permute.xlu2 %381 }
  0xfa   :  { %v318_v59 = vsel %vm315_vm3, %v734_v54, -inf }
  0xfb   :  { %v316_v62 = vsel %vm315_vm3, %v738_v56, -inf }
  0xff   :  { %v310_v53 = vpop.xlane.xlu1 %309 }
 0x100   :  { %v736_v55 = vadd.f32 %v310_v53, %v179_v29 }
 0x101   :  { %v281_v58 = vpop.xlane.xlu0 %280  ;;  %v384_v13 = vpop.permute.xlu2 %383 }
 0x102   :  { %v320_v57 = vsel %vm319_vm2, %v736_v55, -inf  ;;  %v744_v60 = vadd.f32 %v281_v58, %v177_v49 }
 0x103   :  { %v322_v61 = vmax.f32 %v318_v59, %v320_v57 }
 0x104   :  { %v317_v63 = vsel %vm315_vm3, %v744_v60, -inf }
 0x105   :  { %v321_v0 = vmax.f32 %v316_v62, %v317_v63 }
 0x107   :  { %v323_v1 = vmax.f32 %v321_v0, %v322_v61 }
 0x109   :  { %v324_v2 = vrot.slane %v323_v1, 4 }
 0x10b   :  { %v325_v3 = vmax.f32 %v323_v1, %v324_v2 }
 0x10d   :  { %v326_v9 = vrot.slane %v325_v3, 2 }
 0x10f   :  { %v327_v10 = vmax.f32 %v325_v3, %v326_v9 }
 0x111   :  { %v328_v11 = vrot.slane %v327_v10, 1 }
 0x113   :  { %v329_v12 = vmax.f32 %v327_v10, %v328_v11 }
 0x114   :  { %v386_v19 = vpop.permute.xlu0 %385 }
 0x115   :  { %v331_v14 = vsub.f32 %v744_v60, %v329_v12  ;;  %v332_v15 = vsub.f32 %v734_v54, %v329_v12  ;;  %v330_v16 = vsub.f32 %v738_v56, %v329_v12  ;;  %v333_v17 = vsub.f32 %v736_v55, %v329_v12  ;;  %v411_v12 = vpop.permute.xlu2 %410 }
 0x117   :  { %v336_v18 = vmul.f32 1.442695, %v331_v14  ;;  %v338_v20 = vmul.f32 1.442695, %v332_v15  ;;  %v334_v21 = vmul.f32 1.442695, %v330_v16  ;;  %v388_v57 = vpop.permute.xlu1 %387 }
 0x118   :  { %v340_v22 = vmul.f32 1.442695, %v333_v17 }
 0x119   :  { %473 = vpow2.f32 %v336_v18 }
 0x11a   :  { %475 = vpow2.f32 %v338_v20 }
 0x11b   :  { %477 = vpow2.f32 %v334_v21 }
 0x11c   :  { %479 = vpow2.f32 %v340_v22 }
 0x11f   :  { %v474_v23 = vpop.eup %473 }
 0x120   :  { %v476_v24 = vpop.eup %475  ;;  %v343_v25 = vsel %vm315_vm3, %v474_v23, 0.0 }
 0x121   :  { %v478_v26 = vpop.eup %477  ;;  %v345_v31 = vsel %vm315_vm3, %v476_v24, 0.0 }
 0x122   :  { %v342_v27 = vsel %vm315_vm3, %v478_v26, 0.0  ;;  %v480_v28 = vpop.eup %479 }
 0x123   :  { %v344_v30 = vadd.f32 %v343_v25, %v342_v27  ;;  %v347_v32 = vsel %vm319_vm2, %v480_v28, 0.0 }
 0x125   :  { %v346_v4 = vadd.f32 %v345_v31, %v344_v30 }
 0x127   :  { %v348_v5 = vadd.f32 %v347_v32, %v346_v4 }
 0x129   :  { %v349_v33 = vrot.slane %v348_v5, 4 }
 0x12b   :  { %v350_v34 = vadd.f32 %v349_v33, %v348_v5 }
 0x12d   :  { %v351_v6 = vrot.slane %v350_v34, 2 }
 0x12f   :  { %v352_v35 = vadd.f32 %v351_v6, %v350_v34 }
 0x131   :  { %v353_v36 = vrot.slane %v352_v35, 1 }
 0x133   :  { %v354_v37 = vadd.f32 %v353_v36, %v352_v35 }
 0x135   :  { %481 = vrcp.f32 %v354_v37  ;;  %v366_v41 = vand.u32 2147483648, %v354_v37  ;;  %v364_v43 = vand.u32 2147483647, %v354_v37  ;;  %vm360_vm5 = vweird.f32 %v354_v37 }
 0x137   :  { %v367_v45 = vor.u32 1.1754944e-38, %v366_v41  ;;  %vm365_vm7 = vcmp.eq.f32.partialorder %v364_v43, 8.507059e+37 }
 0x13b   :  { %v482_v38 = vpop.eup %481 }
 0x13c   :  { %v356_v39 = vmul.f32 %v482_v38, %v354_v37  ;;  %vm361_vm4 = vweird.f32 %v482_v38 }
 0x13d   :  { %vm362_vm6 = vmor %vm360_vm5, %vm361_vm4 }
 0x13e   :  { %v357_v7 = vsub.f32 1.0, %v356_v39 }
 0x140   :  { %v358_v42 = vmul.f32 %v482_v38, %v357_v7 }
 0x142   :  { %v359_v44 = vadd.f32 %v482_v38, %v358_v42 }
 0x144   :  { %v363_v8 = vsel %vm362_vm6, %v482_v38, %v359_v44 }
 0x145   :  { %v368_v46 = vsel %vm365_vm7, %v367_v45, %v363_v8 }
 0x146   :  { %v369_v47 = vmul.f32 %v478_v26, %v368_v46  ;;  %v370_v48 = vmul.f32 %v474_v23, %v368_v46  ;;  %v372_v49 = vmul.f32 %v480_v28, %v368_v46  ;;  %v371_v50 = vmul.f32 %v476_v24, %v368_v46 }
 0x148   :  { %v373_v29 = vmul.f32 %v369_v47, %v738_v56  ;;  %v374_v51 = vmul.f32 %v370_v48, %v744_v60  ;;  %v376_v52 = vmul.f32 %v372_v49, %v736_v55  ;;  %v375_v53 = vmul.f32 %v371_v50, %v734_v54 }
 0x14a   :  { %v393_v58 = vmul.f32 %v382_v40, %v373_v29  ;;  %v394_v59 = vmul.f32 %v384_v13, %v374_v51  ;;  %v395_v61 = vmul.f32 %v386_v19, %v375_v53  ;;  %v396_v0 = vmul.f32 %v388_v57, %v376_v52 }
 0x14c   :  { %v397_v62 = vsel %vm315_vm3, %v393_v58, 0.0  ;;  %v398_v63 = vsel %vm315_vm3, %v394_v59, 0.0  ;;  %v400_v2 = vsel %vm315_vm3, %v395_v61, 0.0  ;;  %v402_v56 = vsel %vm319_vm2, %v396_v0, 0.0 }
 0x14d   :  { %v399_v1 = vadd.f32 %v398_v63, %v397_v62 }
 0x14f   :  { %v401_v3 = vadd.f32 %v400_v2, %v399_v1 }
 0x151   :  { %v403_v60 = vadd.f32 %v402_v56, %v401_v3 }
 0x153   :  { %v404_v9 = vrot.slane %v403_v60, 4 }
 0x155   :  { %v405_v55 = vadd.f32 %v404_v9, %v403_v60 }
 0x157   :  { %v406_v10 = vrot.slane %v405_v55, 2 }
 0x159   :  { %v407_v54 = vadd.f32 %v406_v10, %v405_v55 }
 0x15b   :  { %v408_v11 = vrot.slane %v407_v54, 1 }
 0x15d   :  { %v409_v14 = vadd.f32 %v408_v11, %v407_v54 }
 0x15f   :  { %v413_v15 = vadd.f32 %v411_v12, %v409_v14 }
 0x161   :  { %v454_v16 = vmul.f32 -1.442695, %v413_v15 }
 0x163   :  { %483 = vpow2.f32 %v454_v16 }
 0x169   :  { %v484_v17 = vpop.eup %483 }
 0x16a   :  { %v417_v18 = vadd.f32 1.0, %v484_v17 }
 0x16c   :  { %485 = vrcp.f32 %v417_v18  ;;  %v429_v23 = vand.u32 2147483648, %v417_v18  ;;  %v427_v25 = vand.u32 2147483647, %v417_v18  ;;  %vm423_vm9 = vweird.f32 %v417_v18 }
 0x16e   :  { %v430_v27 = vor.u32 1.1754944e-38, %v429_v23  ;;  %vm428_vm12 = vcmp.eq.f32.partialorder %v427_v25, 8.507059e+37 }
 0x172   :  { %v486_v20 = vpop.eup %485 }
 0x173   :  { %v419_v21 = vmul.f32 %v486_v20, %v417_v18  ;;  %vm424_vm8 = vweird.f32 %v486_v20 }
 0x174   :  { %vm425_vm10 = vmor %vm423_vm9, %vm424_vm8 }
 0x175   :  { %v420_v22 = vsub.f32 1.0, %v419_v21 }
 0x177   :  { %v421_v24 = vmul.f32 %v486_v20, %v420_v22 }
 0x179   :  { %v422_v26 = vadd.f32 %v486_v20, %v421_v24 }
 0x17b   :  { %v426_v28 = vsel %vm425_vm10, %v486_v20, %v422_v26 }
 0x17c   :  { %v431_v30 = vsel %vm428_vm12, %v430_v27, %v426_v28 }
 0x17d   :  { %434 = vst.msk [vmem:[#allocation5] sm:$0x1] %vm433_vm11, %v431_v30 }
 0x17e   :  { %445 = dma.vmem_to_hbm [thread:$0]  %s441_s21, 16, %s443_s24, [#allocation4]  }
 0x17f   :  { %537 = dma.done.wait [#allocation4], 16  }
 0x180   :  { %538 = vsyncadd [#allocation4], 4294967280 }
 0x181   :  { %450 = vsyncpa [#allocation3], 1 }
 0x182   :  { %451 = vsyncpa [#allocation4], 1 }

</bundles_post_ra>
